<compile_context>
chip_gen: v5e
topology: v5e:2x2
jax: 0.10.0
libtpu: 0.0.40
codegen_flags: <defaults>
</compile_context>

<pallas_src>
import functools

import jax
import jax.numpy as jnp
from jax import lax
from jax.experimental import pallas as pl
from jax.experimental.pallas import tpu as pltpu

NOISE_STD = 0.25
NUM_SAMPLES = 16          # small Monte-Carlo count for the test harness
NUM_CLASSES = 10
LANES = 128               # TPU lane width; class dim padded to this
SUBLANES = 8              # f32 sublane tile; output rows padded to this
NEG_SENTINEL = -1e30      # finite "never wins the argmax" bias for padded classes


def _rs_kernel(inp_ref, w_ref, b_ref, out_ref, *, num_samples, batch):
    """Single grid step over ALL Monte-Carlo samples.

    inp_ref: [S*B, D]   bf16 noisy inputs (x + sigma*n), sample-major rows
    w_ref:   [D, 128]   bf16 classifier weights, zero-padded classes
    b_ref:   [1, 128]   f32 bias; padded classes carry -1e30 so they never win
    out_ref: [B_pad,128] f32 class frequencies (rows >= B, cols >= C are pad/0)
    """
    sb = num_samples * batch

    # One MXU matmul over every sample row, f32 accumulation, + bias.
    logits = jnp.dot(inp_ref[...], w_ref[...],
                     preferred_element_type=jnp.float32) + b_ref[...]       # [S*B, 128]

    # Vectorized argmax -> one-hot over the lane-dense class dim
    # (first-max tie-break, matching torch.argmax; padded lanes sit at -1e30).
    n_lanes = logits.shape[1]
    cls_idx = lax.broadcasted_iota(jnp.int32, (sb, n_lanes), 1)
    mx = jnp.max(logits, axis=1, keepdims=True)
    first_max = jnp.min(jnp.where(logits == mx, cls_idx, n_lanes),
                        axis=1, keepdims=True)
    onehot = (cls_idx == first_max).astype(jnp.bfloat16)                    # [S*B, 128]

    # Per-batch count reduction as one MXU matmul:
    #   selector[p, r] = 1 if (r % batch) == p else 0   (p >= batch rows -> all 0)
    # 0/1 operands and counts <= num_samples are exact in bf16 + f32 accum.
    b_pad = out_ref.shape[0]
    r_idx = lax.broadcasted_iota(jnp.int32, (b_pad, sb), 1)
    p_idx = lax.broadcasted_iota(jnp.int32, (b_pad, sb), 0)
    selector = ((r_idx % batch) == p_idx).astype(jnp.bfloat16)              # [B_pad, S*B]
    counts = jnp.dot(selector, onehot, preferred_element_type=jnp.float32)  # [B_pad, 128]

    # Single unmasked full-tile store (padded rows/cols are exactly 0).
    out_ref[...] = counts * (1.0 / num_samples)


def randomized_smoothing_forward(x, w, b, noise, *, noise_std=NOISE_STD):
    """x: [B, C, H, W] f32; w: [D, C]; b: [C]; noise: [S, B, C, H, W] std normals."""
    B = x.shape[0]
    D = w.shape[0]
    C = w.shape[1]
    S = noise.shape[0]

    C_pad = pl.cdiv(C, LANES) * LANES          # 10 -> 128 (lane-dense classes)
    B_pad = pl.cdiv(B, SUBLANES) * SUBLANES    # 2  -> 8   (aligned output tile)

    # ---- wrapper-side glue (layout + fold, no transpose) ----
    x_flat = x.reshape(B, D)                                  # torch .view(B, -1)
    # Fold clean input + noise scale in one fused elementwise pass; keep the
    # natural sample-major layout: row r = s*B + b.
    noisy = (x_flat[None, :, :] + noise_std * noise.reshape(S, B, D)).reshape(S * B, D)
    noisy_bf16 = noisy.astype(jnp.bfloat16)
    # Pad classes to 128 lanes: zero weight columns, -1e30 bias so a padded
    # class can never win the argmax.  Matmul operands in bf16 (f32 accum).
    w_pad = jnp.pad(w, ((0, 0), (0, C_pad - C))).astype(jnp.bfloat16)
    b_pad = jnp.concatenate(
        [b.reshape(1, C).astype(jnp.float32),
         jnp.full((1, C_pad - C), NEG_SENTINEL, dtype=jnp.float32)], axis=1)

    kernel = functools.partial(_rs_kernel, num_samples=S, batch=B)

    grid_spec = pltpu.PrefetchScalarGridSpec(
        num_scalar_prefetch=0,
        grid=(1,),                     # everything fits comfortably in VMEM
        in_specs=[
            pl.BlockSpec((S * B, D), lambda i: (0, 0)),      # noisy inputs (bf16)
            pl.BlockSpec((D, C_pad), lambda i: (0, 0)),      # W (bf16, lane-padded)
            pl.BlockSpec((1, C_pad), lambda i: (0, 0)),      # bias (f32, lane-padded)
        ],
        out_specs=pl.BlockSpec((B_pad, C_pad), lambda i: (0, 0)),
    )

    cost = pl.CostEstimate(
        flops=2 * S * B * D * C_pad + 2 * B_pad * (S * B) * C_pad,
        transcendentals=0,
        bytes_accessed=2 * (S * B * D + D * C_pad) + 4 * (C_pad + B_pad * C_pad),
    )

    freqs_pad = pl.pallas_call(
        kernel,
        out_shape=jax.ShapeDtypeStruct((B_pad, C_pad), jnp.float32),
        grid_spec=grid_spec,
        compiler_params=pltpu.CompilerParams(
            dimension_semantics=("arbitrary",)),
        cost_estimate=cost,
    )(noisy_bf16, w_pad, b_pad)

    # slice the padded (8, 128) tile back to the true [B, num_classes] output
    return freqs_pad[:B, :C]


if __name__ == "__main__":
    key = jax.random.PRNGKey(0)
    k_x, k_w, k_b, k_n = jax.random.split(key, 4)

    B, C_in, H, W = 2, 4, 16, 16
    D = C_in * H * W

    x = jax.random.normal(k_x, (B, C_in, H, W), dtype=jnp.float32)

    # Deterministic base-model parameters (linear classifier stand-in for self.model)
    w = jax.random.normal(k_w, (D, NUM_CLASSES), dtype=jnp.float32) * 0.05
    b = jax.random.normal(k_b, (NUM_CLASSES,), dtype=jnp.float32) * 0.05

    # Pre-drawn standard-normal noise (randn_like(x) for each Monte-Carlo sample)
    noise = jax.random.normal(k_n, (NUM_SAMPLES, B, C_in, H, W), dtype=jnp.float32)

    freqs = randomized_smoothing_forward(x, w, b, noise)
    freqs = jax.block_until_ready(freqs)

    # Pure-JAX reference matching the PyTorch module semantics:
    #   argmax((x + sigma*n) @ W + b) -> class counts / num_samples.
    # The matmul operands are cast to bf16 exactly as the kernel's MXU path
    # does (f32 accumulation), per the review's bf16 correctness note.
    x_flat = x.reshape(B, D)
    noisy_ref = (x_flat[None] + NOISE_STD * noise.reshape(NUM_SAMPLES, B, D))
    logits_ref = jnp.einsum(
        "sbd,dc->sbc",
        noisy_ref.astype(jnp.bfloat16), w.astype(jnp.bfloat16),
        preferred_element_type=jnp.float32) + b                           # [S, B, C]
    preds_ref = jnp.argmax(logits_ref, axis=-1)                           # [S, B]
    counts_ref = jnp.stack(
        [(preds_ref == i).sum(axis=0) for i in range(NUM_CLASSES)], axis=1
    ).astype(jnp.float32)
    freqs_ref = counts_ref / NUM_SAMPLES

    assert freqs.shape == (B, NUM_CLASSES), freqs.shape
    assert jnp.allclose(freqs, freqs_ref, atol=1e-6), (freqs, freqs_ref)
    assert jnp.allclose(jnp.sum(freqs, axis=1), 1.0, atol=1e-6)

    print("KERNEL_OK")
</pallas_src>

<mosaic_0001>
module attributes {stable_mosaic.version = 11 : i64} {
  func.func @_rs_kernel(%arg0: i32, %arg1: memref<32x1024xbf16, #tpu.memory_space<vmem>>, %arg2: memref<1024x128xbf16, #tpu.memory_space<vmem>>, %arg3: memref<1x128xf32, #tpu.memory_space<vmem>>, %arg4: memref<8x128xf32, #tpu.memory_space<vmem>>) attributes {dimension_semantics = [#tpu.dimension_semantics<arbitrary>], iteration_bounds = array<i64: 1>, scalar_prefetch = 0 : i64, scratch_operands = 0 : i64, tpu.core_type = #tpu.core_type<tc>, window_params = [{pipeline_mode = #tpu.pipeline_mode<synchronous>, transform_indices = @transform_0, window_bounds = array<i64: 32, 1024>}, {pipeline_mode = #tpu.pipeline_mode<synchronous>, transform_indices = @transform_1, window_bounds = array<i64: 1024, 128>}, {pipeline_mode = #tpu.pipeline_mode<synchronous>, transform_indices = @transform_2, window_bounds = array<i64: 1, 128>}, {pipeline_mode = #tpu.pipeline_mode<synchronous>, transform_indices = @transform_3, window_bounds = array<i64: 8, 128>}]} {
    %c0 = arith.constant 0 : index
    %c0_0 = arith.constant 0 : index
    %0 = vector.load %arg1[%c0, %c0_0] : memref<32x1024xbf16, #tpu.memory_space<vmem>>, vector<32x1024xbf16>
    %c0_1 = arith.constant 0 : index
    %c0_2 = arith.constant 0 : index
    %1 = vector.load %arg2[%c0_1, %c0_2] : memref<1024x128xbf16, #tpu.memory_space<vmem>>, vector<1024x128xbf16>
    %cst = arith.constant dense<0.000000e+00> : vector<32x128xf32>
    %2 = tpu.matmul %0, %1, %cst {dimension_numbers = #tpu.dot_dimension_numbers<[1], [0], [0], [1], [0, 0, 1, 1], [], []>} : vector<32x1024xbf16>, vector<1024x128xbf16>, vector<32x128xf32> -> vector<32x128xf32>
    %c0_3 = arith.constant 0 : index
    %c0_4 = arith.constant 0 : index
    %3 = vector.load %arg3[%c0_3, %c0_4] : memref<1x128xf32, #tpu.memory_space<vmem>>, vector<1x128xf32>
    %4 = vector.broadcast %3 : vector<1x128xf32> to vector<32x128xf32>
    %5 = arith.addf %2, %4 : vector<32x128xf32>
    %6 = tpu.iota {dimensions = array<i32: 1>} : vector<32x128xi32>
    %cst_5 = arith.constant dense<0xFF800000> : vector<32xf32>
    %7 = vector.multi_reduction <maximumf>, %5, %cst_5 [1] : vector<32x128xf32> to vector<32xf32>
    %8 = vector.shape_cast %7 : vector<32xf32> to vector<32x1xf32>
    %9 = vector.broadcast %8 : vector<32x1xf32> to vector<32x128xf32>
    %10 = arith.cmpf oeq, %5, %9 : vector<32x128xf32>
    %c128_i32 = arith.constant 128 : i32
    %11 = vector.broadcast %c128_i32 : i32 to vector<32x128xi32>
    %12 = arith.select %10, %6, %11 : vector<32x128xi1>, vector<32x128xi32>
    %cst_6 = arith.constant dense<2147483647> : vector<32xi32>
    %13 = vector.multi_reduction <minsi>, %12, %cst_6 [1] : vector<32x128xi32> to vector<32xi32>
    %14 = vector.shape_cast %13 : vector<32xi32> to vector<32x1xi32>
    %15 = vector.broadcast %14 : vector<32x1xi32> to vector<32x128xi32>
    %16 = arith.cmpi eq, %6, %15 : vector<32x128xi32>
    %17 = arith.extui %16 : vector<32x128xi1> to vector<32x128xi32>
    %18 = arith.sitofp %17 : vector<32x128xi32> to vector<32x128xf32>
    %19 = arith.truncf %18 : vector<32x128xf32> to vector<32x128xbf16>
    %20 = tpu.iota {dimensions = array<i32: 1>} : vector<8x32xi32>
    %21 = tpu.iota {dimensions = array<i32: 0>} : vector<8x32xi32>
    %c2_i32 = arith.constant 2 : i32
    %c0_i32 = arith.constant 0 : i32
    %22 = arith.cmpi eq, %c2_i32, %c0_i32 : i32
    %c1_i32 = arith.constant 1 : i32
    %23 = arith.select %22, %c1_i32, %c2_i32 : i32
    %24 = vector.broadcast %23 : i32 to vector<8x32xi32>
    %25 = arith.remsi %20, %24 : vector<8x32xi32>
    %c0_i32_7 = arith.constant 0 : i32
    %26 = vector.broadcast %c0_i32_7 : i32 to vector<8x32xi32>
    %27 = arith.cmpi ne, %25, %26 : vector<8x32xi32>
    %c0_i32_8 = arith.constant 0 : i32
    %28 = vector.broadcast %c0_i32_8 : i32 to vector<8x32xi32>
    %29 = arith.cmpi slt, %25, %28 : vector<8x32xi32>
    %c0_i32_9 = arith.constant 0 : i32
    %30 = arith.cmpi slt, %23, %c0_i32_9 : i32
    %31 = vector.broadcast %30 : i1 to vector<8x32xi1>
    %32 = vector.broadcast %31 : vector<8x32xi1> to vector<8x32xi1>
    %33 = arith.xori %29, %32 : vector<8x32xi1>
    %34 = arith.andi %33, %27 : vector<8x32xi1>
    %35 = vector.broadcast %23 : i32 to vector<8x32xi32>
    %36 = arith.addi %25, %35 : vector<8x32xi32>
    %37 = arith.select %34, %36, %25 : vector<8x32xi1>, vector<8x32xi32>
    %38 = arith.cmpi eq, %37, %21 : vector<8x32xi32>
    %39 = arith.extui %38 : vector<8x32xi1> to vector<8x32xi32>
    %40 = arith.sitofp %39 : vector<8x32xi32> to vector<8x32xf32>
    %41 = arith.truncf %40 : vector<8x32xf32> to vector<8x32xbf16>
    %cst_10 = arith.constant dense<0.000000e+00> : vector<8x128xf32>
    %42 = tpu.matmul %41, %19, %cst_10 {dimension_numbers = #tpu.dot_dimension_numbers<[1], [0], [0], [1], [0, 0, 1, 1], [], []>} : vector<8x32xbf16>, vector<32x128xbf16>, vector<8x128xf32> -> vector<8x128xf32>
    %cst_11 = arith.constant 6.250000e-02 : f32
    %43 = vector.broadcast %cst_11 : f32 to vector<8x128xf32>
    %44 = arith.mulf %42, %43 : vector<8x128xf32>
    %c0_12 = arith.constant 0 : index
    %c0_13 = arith.constant 0 : index
    %45 = vector.load %arg4[%c0_12, %c0_13] : memref<8x128xf32, #tpu.memory_space<vmem>>, vector<8x128xf32>
    tpu.vector_store %arg4[%c0_12, %c0_13], %44 {strides = array<i32>} : memref<8x128xf32, #tpu.memory_space<vmem>>, vector<8x128xf32>,
    return
  }
  func.func @transform_0(%arg0: i32) -> (i32, i32) {
    %c0_i32 = arith.constant 0 : i32
    %c0_i32_0 = arith.constant 0 : i32
    %c0_i32_1 = arith.constant 0 : i32
    return %c0_i32, %c0_i32_0 : i32, i32
  }
  func.func @transform_1(%arg0: i32) -> (i32, i32) {
    %c0_i32 = arith.constant 0 : i32
    %c0_i32_0 = arith.constant 0 : i32
    %c0_i32_1 = arith.constant 0 : i32
    return %c0_i32, %c0_i32_0 : i32, i32
  }
  func.func @transform_2(%arg0: i32) -> (i32, i32) {
    %c0_i32 = arith.constant 0 : i32
    %c0_i32_0 = arith.constant 0 : i32
    %c0_i32_1 = arith.constant 0 : i32
    return %c0_i32, %c0_i32_0 : i32, i32
  }
  func.func @transform_3(%arg0: i32) -> (i32, i32) {
    %c0_i32 = arith.constant 0 : i32
    %c0_i32_0 = arith.constant 0 : i32
    %c0_i32_1 = arith.constant 0 : i32
    return %c0_i32, %c0_i32_0 : i32, i32
  }
}

</mosaic_0001>

<bundles_post_ra>
// kernel: tpu_custom_call.1
= control target key start
LH: loop header
LB: loop body
LE: loop exit
PB: predicated region body
PF: predicated region fallthrough
CT: control target
= control target key end

     0   :  { %8 = vsyncpa [#allocation3], 0  ;;  %s1505_s0 = inlined_call_operand.hbm [shape: bf16[32,1024], index: 0, kind: input, shape index: {}]   ;;  %s1506_s1 = inlined_call_operand.hbm [shape: bf16[1024,128], index: 1, kind: input, shape index: {}]   ;;  %s1507_s2 = inlined_call_operand.vmem [shape: f32[1,128], index: 2, kind: input, shape index: {}]   ;;  %s1508_s3 = inlined_call_operand.hbm [shape: f32[8,128], index: 3, kind: output, shape index: {}]  }
   0x1   :  { %9 = vsyncpa [#allocation6], 0 }
   0x2   :  { %10 = vsyncpa [#allocation4], 0  ;;  %s15_s14 = sshll.u32 %s1505_s0, 4  ;;  %s1453_s15 = smov [#allocation2]   ;;  %s16_s14 = int_to_ptr.hbm [resolvable:$true] %s15_s14 }
   0x3   :  { %s17_s16 = sshll.u32 %s1453_s15, 4  ;;  %s28_s19 = sshll.u32 %s1506_s1, 4  ;;  %s18_s16 = int_to_ptr.vmem [resolvable:$true] %s17_s16  ;;  %s29_s19 = int_to_ptr.hbm [resolvable:$true] %s28_s19 }
   0x4   :  { %s1454_s20 = smov 512   ;;  %s1455_s21 = smov 32  }
   0x5   :  { %23 = dma.hbm_to_vmem [thread:$0]  %s16_s14, 2048, %s18_s16, [#allocation3], %s1454_s20, %s1454_s20, %s1455_s21  }
   0x6   :  { %s1456_s22 = smov [#allocation5]   ;;  %s1457_s24 = smov 64  }
   0x7   :  { %s30_s23 = sshll.u32 %s1456_s22, 4  ;;  %s1458_s25 = smov 4   ;;  %s31_s23 = int_to_ptr.vmem [resolvable:$true] %s30_s23 }
   0x8   :  { %36 = dma.hbm_to_vmem [thread:$0]  %s29_s19, 8192, %s31_s23, [#allocation6], %s1457_s24, %s1457_s24, %s1458_s25  }
   0x9   :  { %1447 = dma.done.wait [#allocation3], 2048  }
   0xa   :  { %1448 = vsyncadd [#allocation3], 4294965248 }
   0xb   :  { %1449 = dma.done.wait [#allocation6], 8192  }
   0xc   :  { %1450 = vsyncadd [#allocation6], 4294959104  ;;  %v1308_v0 = vld [vmem:[#allocation5 + $0x38] sm:$0xff]  ;;  %v1307_v4 = vld [vmem:[#allocation5 + $0x30] sm:$0xff]  ;;  %vm918_vm15 = vcmask 261120   ;;  %s944_s29 = sshll.u32 %s1508_s3, 4  ;;  %s945_s29 = int_to_ptr.hbm [resolvable:$true] %s944_s29 }
   0xd   :  { %v1316_v1 = vld [vmem:[#allocation5 + $0x78] sm:$0xff]  ;;  %660 = vmatpush.bf16.msra.mxu0 %v1308_v0  ;;  %v1315_v5 = vld [vmem:[#allocation5 + $0x70] sm:$0xff]  ;;  %v1306_v8 = vld [vmem:[#allocation5 + $0x28] sm:$0xff] }
   0xe   :  { %v1324_v2 = vld [vmem:[#allocation5 + $0xb8] sm:$0xff]  ;;  %679 = vmatpush.bf16.msra.mxu1 %v1316_v1  ;;  %v1323_v6 = vld [vmem:[#allocation5 + $0xb0] sm:$0xff]  ;;  %v1314_v9 = vld [vmem:[#allocation5 + $0x68] sm:$0xff] }
   0xf   :  { %v1332_v3 = vld [vmem:[#allocation5 + $0xf8] sm:$0xff]  ;;  %698 = vmatpush.bf16.msra.mxu2 %v1324_v2  ;;  %v1331_v7 = vld [vmem:[#allocation5 + $0xf0] sm:$0xff]  ;;  %v1322_v10 = vld [vmem:[#allocation5 + $0xa8] sm:$0xff] }
  0x10   :  { %717 = vmatpush.bf16.msra.mxu3 %v1332_v3  ;;  %v1330_v11 = vld [vmem:[#allocation5 + $0xe8] sm:$0xff]  ;;  %v1305_v12 = vld [vmem:[#allocation5 + $0x20] sm:$0xff]  ;;  %v1304_v16 = vld [vmem:[#allocation5 + $0x18] sm:$0xff] }
  0x11   :  { %661 = vmatpush.bf16.msra.mxu0 %v1307_v4  ;;  %v1313_v13 = vld [vmem:[#allocation5 + $0x60] sm:$0xff]  ;;  %v1312_v17 = vld [vmem:[#allocation5 + $0x58] sm:$0xff]  ;;  %v1303_v20 = vld [vmem:[#allocation5 + $0x10] sm:$0xff] }
  0x12   :  { %680 = vmatpush.bf16.msra.mxu1 %v1315_v5  ;;  %v1321_v14 = vld [vmem:[#allocation5 + $0xa0] sm:$0xff]  ;;  %v1320_v18 = vld [vmem:[#allocation5 + $0x98] sm:$0xff]  ;;  %v1311_v21 = vld [vmem:[#allocation5 + $0x50] sm:$0xff] }
  0x13   :  { %699 = vmatpush.bf16.msra.mxu2 %v1323_v6  ;;  %v1329_v15 = vld [vmem:[#allocation5 + $0xe0] sm:$0xff]  ;;  %v1328_v19 = vld [vmem:[#allocation5 + $0xd8] sm:$0xff]  ;;  %v1319_v22 = vld [vmem:[#allocation5 + $0x90] sm:$0xff] }
  0x14   :  { %718 = vmatpush.bf16.msra.mxu3 %v1331_v7  ;;  %v1327_v23 = vld [vmem:[#allocation5 + $0xd0] sm:$0xff]  ;;  %v1302_v24 = vld [vmem:[#allocation5 + $0x8] sm:$0xff]  ;;  %v1301_v28 = vld [vmem:[#allocation5] sm:$0xff] }
  0x15   :  { %662 = vmatpush.bf16.msra.mxu0 %v1306_v8  ;;  %v1310_v25 = vld [vmem:[#allocation5 + $0x48] sm:$0xff]  ;;  %v1309_v29 = vld [vmem:[#allocation5 + $0x40] sm:$0xff]  ;;  %v1340_v40 = vld [vmem:[#allocation5 + $0x138] sm:$0xff] }
  0x16   :  { %681 = vmatpush.bf16.msra.mxu1 %v1314_v9  ;;  %v1318_v26 = vld [vmem:[#allocation5 + $0x88] sm:$0xff]  ;;  %v1317_v30 = vld [vmem:[#allocation5 + $0x80] sm:$0xff]  ;;  %v1348_v41 = vld [vmem:[#allocation5 + $0x178] sm:$0xff] }
  0x17   :  { %700 = vmatpush.bf16.msra.mxu2 %v1322_v10  ;;  %v1326_v27 = vld [vmem:[#allocation5 + $0xc8] sm:$0xff]  ;;  %v1325_v31 = vld [vmem:[#allocation5 + $0xc0] sm:$0xff]  ;;  %v1356_v46 = vld [vmem:[#allocation5 + $0x1b8] sm:$0xff] }
  0x18   :  { %719 = vmatpush.bf16.msra.mxu3 %v1330_v11  ;;  %v957_v32 = vld [vmem:[#allocation2] sm:$0xf]  ;;  %v1285_v34 = vld [vmem:[#allocation2 + $0x4] sm:$0xf]  ;;  %v965_v36 = vld [vmem:[#allocation2 + $0x8] sm:$0xf] }
  0x19   :  { %663 = vmatpush.bf16.msra.mxu0 %v1305_v12  ;;  %v1289_v33 = vld [vmem:[#allocation2 + $0x1c] sm:$0xf0]  ;;  %v959_v35 = vld [vmem:[#allocation2 + $0x20] sm:$0xf0]  ;;  %v1290_v37 = vld [vmem:[#allocation2 + $0x24] sm:$0xf0] }
  0x1a   :  { %682 = vmatpush.bf16.msra.mxu1 %v1313_v13  ;;  %v1286_v38 = vld [vmem:[#allocation2 + $0xc] sm:$0xf]  ;;  %v958_v42 = vor.u32 %v1289_v33, %v957_v32  ;;  %v962_v43 = vor.u32 %v1285_v34, %v959_v35  ;;  %v966_v44 = vor.u32 %v1290_v37, %v965_v36  ;;  %v1364_v47 = vld [vmem:[#allocation5 + $0x1f8] sm:$0xff]  ;;  %v1339_v48 = vld [vmem:[#allocation5 + $0x130] sm:$0xff] }
  0x1b   :  { %701 = vmatpush.bf16.msra.mxu2 %v1321_v14  ;;  %v967_v39 = vld [vmem:[#allocation2 + $0x28] sm:$0xf0]  ;;  %v1347_v49 = vld [vmem:[#allocation5 + $0x170] sm:$0xff]  ;;  %v1337_v56 = vld [vmem:[#allocation5 + $0x120] sm:$0xff] }
  0x1c   :  { %720 = vmatpush.bf16.msra.mxu3 %v1329_v15  ;;  %v970_v45 = vor.u32 %v1286_v38, %v967_v39  ;;  %v1355_v50 = vld [vmem:[#allocation5 + $0x1b0] sm:$0xff]  ;;  %v1338_v52 = vld [vmem:[#allocation5 + $0x128] sm:$0xff]  ;;  %v1345_v57 = vld [vmem:[#allocation5 + $0x160] sm:$0xff] }
  0x1d   :  { %664 = vmatpush.bf16.msra.mxu0 %v1304_v16  ;;  %v1363_v51 = vld [vmem:[#allocation5 + $0x1f0] sm:$0xff]  ;;  %v1346_v53 = vld [vmem:[#allocation5 + $0x168] sm:$0xff]  ;;  %v1353_v58 = vld [vmem:[#allocation5 + $0x1a0] sm:$0xff] }
  0x1e   :  { %683 = vmatpush.bf16.msra.mxu1 %v1312_v17  ;;  %v1354_v54 = vld [vmem:[#allocation5 + $0x1a8] sm:$0xff]  ;;  %v1361_v59 = vld [vmem:[#allocation5 + $0x1e0] sm:$0xff]  ;;  %v1336_v4 = vld [vmem:[#allocation5 + $0x118] sm:$0xff] }
  0x1f   :  { %702 = vmatpush.bf16.msra.mxu2 %v1320_v18  ;;  %v1362_v55 = vld [vmem:[#allocation5 + $0x1e8] sm:$0xff]  ;;  %v989_v60 = vld [vmem:[#allocation2 + $0x40] sm:$0xf]  ;;  %v1293_v62 = vld [vmem:[#allocation2 + $0x44] sm:$0xf] }
  0x20   :  { %721 = vmatpush.bf16.msra.mxu3 %v1328_v19  ;;  %v1297_v61 = vld [vmem:[#allocation2 + $0x5c] sm:$0xf0]  ;;  %v991_v63 = vld [vmem:[#allocation2 + $0x60] sm:$0xf0]  ;;  %v997_v0 = vld [vmem:[#allocation2 + $0x48] sm:$0xf] }
  0x21   :  { %665 = vmatpush.bf16.msra.mxu0 %v1303_v20  ;;  %v1298_v1 = vld [vmem:[#allocation2 + $0x64] sm:$0xf0]  ;;  %v1294_v2 = vld [vmem:[#allocation2 + $0x4c] sm:$0xf]  ;;  %v1344_v5 = vld [vmem:[#allocation5 + $0x158] sm:$0xff]  ;;  %v990_v6 = vor.u32 %v1297_v61, %v989_v60  ;;  %v994_v7 = vor.u32 %v1293_v62, %v991_v63 }
  0x22   :  { %684 = vmatpush.bf16.msra.mxu1 %v1311_v21  ;;  %v999_v3 = vld [vmem:[#allocation2 + $0x68] sm:$0xf0]  ;;  %v998_v8 = vor.u32 %v1298_v1, %v997_v0  ;;  %v1352_v10 = vld [vmem:[#allocation5 + $0x198] sm:$0xff]  ;;  %v1335_v12 = vld [vmem:[#allocation5 + $0x110] sm:$0xff] }
  0x23   :  { %703 = vmatpush.bf16.msra.mxu2 %v1319_v22  ;;  %v1002_v9 = vor.u32 %v1294_v2, %v999_v3  ;;  %v1360_v11 = vld [vmem:[#allocation5 + $0x1d8] sm:$0xff]  ;;  %v1343_v13 = vld [vmem:[#allocation5 + $0x150] sm:$0xff]  ;;  %v1334_v16 = vld [vmem:[#allocation5 + $0x108] sm:$0xff] }
  0x24   :  { %722 = vmatpush.bf16.msra.mxu3 %v1327_v23  ;;  %v1351_v14 = vld [vmem:[#allocation5 + $0x190] sm:$0xff]  ;;  %v1342_v17 = vld [vmem:[#allocation5 + $0x148] sm:$0xff]  ;;  %v1333_v20 = vld [vmem:[#allocation5 + $0x100] sm:$0xff] }
  0x25   :  { %666 = vmatpush.bf16.msra.mxu0 %v1302_v24  ;;  %v1359_v15 = vld [vmem:[#allocation5 + $0x1d0] sm:$0xff]  ;;  %v1350_v18 = vld [vmem:[#allocation5 + $0x188] sm:$0xff]  ;;  %v1341_v21 = vld [vmem:[#allocation5 + $0x140] sm:$0xff] }
  0x26   :  { %685 = vmatpush.bf16.msra.mxu1 %v1310_v25  ;;  %v1358_v19 = vld [vmem:[#allocation5 + $0x1c8] sm:$0xff]  ;;  %v1349_v22 = vld [vmem:[#allocation5 + $0x180] sm:$0xff]  ;;  %v973_v24 = vld [vmem:[#allocation2 + $0x10] sm:$0xf] }
  0x27   :  { %704 = vmatpush.bf16.msra.mxu2 %v1318_v26  ;;  %v1357_v23 = vld [vmem:[#allocation5 + $0x1c0] sm:$0xff]  ;;  %v1291_v25 = vld [vmem:[#allocation2 + $0x2c] sm:$0xf0]  ;;  %v1287_v26 = vld [vmem:[#allocation2 + $0x14] sm:$0xf] }
  0x28   :  { %723 = vmatpush.bf16.msra.mxu3 %v1326_v27  ;;  %v975_v27 = vld [vmem:[#allocation2 + $0x30] sm:$0xf0]  ;;  %v974_v32 = vor.u32 %v1291_v25, %v973_v24  ;;  %v1005_v36 = vld [vmem:[#allocation2 + $0x50] sm:$0xf] }
  0x29   :  { %667 = vmatpush.bf16.msra.mxu0 %v1301_v28  ;;  %v981_v28 = vld [vmem:[#allocation2 + $0x18] sm:$0xf]  ;;  %v978_v33 = vor.u32 %v1287_v26, %v975_v27  ;;  %v1299_v37 = vld [vmem:[#allocation2 + $0x6c] sm:$0xf0]  ;;  %v1295_v38 = vld [vmem:[#allocation2 + $0x54] sm:$0xf] }
  0x2a   :  { %686 = vmatpush.bf16.msra.mxu1 %v1309_v29  ;;  %v1292_v29 = vld [vmem:[#allocation2 + $0x34] sm:$0xf0]  ;;  %v1007_v39 = vld [vmem:[#allocation2 + $0x70] sm:$0xf0] }
  0x2b   :  { %705 = vmatpush.bf16.msra.mxu2 %v1317_v30  ;;  %v1288_v30 = vld [vmem:[#allocation2 + $0x1c] sm:$0xf]  ;;  %v982_v34 = vor.u32 %v1292_v29, %v981_v28 }
  0x2c   :  { %724 = vmatpush.bf16.msra.mxu3 %v1325_v31  ;;  %668 = vmatmul.bf16.vlgmr.msra.gmra.mxu0 %v958_v42  ;;  %v983_v31 = vld [vmem:[#allocation2 + $0x38] sm:$0xf0] }
  0x2d   :  { %736 = vmatpush.bf16.msrb.mxu0 %v1340_v40  ;;  %687 = vmatmul.bf16.vlgmr.msra.gmra.mxu1 %v962_v43  ;;  %v986_v35 = vor.u32 %v1288_v30, %v983_v31  ;;  %v1013_v40 = vld [vmem:[#allocation2 + $0x58] sm:$0xf]  ;;  %v1296_v42 = vld [vmem:[#allocation2 + $0x5c] sm:$0xf] }
  0x2e   :  { %755 = vmatpush.bf16.msrb.mxu1 %v1348_v41  ;;  %706 = vmatmul.bf16.vlgmr.msra.gmra.mxu2 %v966_v44  ;;  %v1300_v41 = vld [vmem:[#allocation2 + $0x74] sm:$0xf0]  ;;  %v1015_v43 = vld [vmem:[#allocation2 + $0x78] sm:$0xf0]  ;;  %v1006_v44 = vor.u32 %v1299_v37, %v1005_v36 }
  0x2f   :  { %725 = vmatmul.bf16.vlgmr.msra.gmra.mxu3 %v970_v45  ;;  %774 = vmatpush.bf16.msrb.mxu2 %v1356_v46  ;;  %v1010_v45 = vor.u32 %v1295_v38, %v1007_v39  ;;  %v1014_v46 = vor.u32 %v1300_v41, %v1013_v40 }
  0x30   :  { %793 = vmatpush.bf16.msrb.mxu3 %v1364_v47  ;;  %v1018_v47 = vor.u32 %v1296_v42, %v1015_v43 }
  0x31   :  { %737 = vmatpush.bf16.msrb.mxu0 %v1339_v48 }
  0x32   :  { %756 = vmatpush.bf16.msrb.mxu1 %v1347_v49 }
  0x33   :  { %775 = vmatpush.bf16.msrb.mxu2 %v1355_v50 }
  0x34   :  { %794 = vmatpush.bf16.msrb.mxu3 %v1363_v51 }
  0x35   :  { %738 = vmatpush.bf16.msrb.mxu0 %v1338_v52 }
  0x36   :  { %757 = vmatpush.bf16.msrb.mxu1 %v1346_v53 }
  0x37   :  { %776 = vmatpush.bf16.msrb.mxu2 %v1354_v54 }
  0x38   :  { %795 = vmatpush.bf16.msrb.mxu3 %v1362_v55 }
  0x39   :  { %739 = vmatpush.bf16.msrb.mxu0 %v1337_v56  ;;  %v1374_v56 = vld [vmem:[%s1507_s2] ss:$0 sm:$0xff]  ;;  %s1461_s2 = smov [#allocation7]  }
  0x3a   :  { %758 = vmatpush.bf16.msrb.mxu1 %v1345_v57  ;;  %s942_s26 = sshll.u32 %s1461_s2, 4  ;;  %s943_s26 = int_to_ptr.vmem [resolvable:$true] %s942_s26 }
  0x3b   :  { %777 = vmatpush.bf16.msrb.mxu2 %v1353_v58 }
  0x3c   :  { %796 = vmatpush.bf16.msrb.mxu3 %v1361_v59  ;;  %673 = vmatmul.bf16.gmra.mxu0 %v990_v6 }
  0x3d   :  { %740 = vmatpush.bf16.msrb.mxu0 %v1336_v4  ;;  %692 = vmatmul.bf16.gmra.mxu1 %v994_v7 }
  0x3e   :  { %759 = vmatpush.bf16.msrb.mxu1 %v1344_v5  ;;  %711 = vmatmul.bf16.gmra.mxu2 %v998_v8 }
  0x3f   :  { %730 = vmatmul.bf16.gmra.mxu3 %v1002_v9  ;;  %778 = vmatpush.bf16.msrb.mxu2 %v1352_v10 }
  0x40   :  { %797 = vmatpush.bf16.msrb.mxu3 %v1360_v11 }
  0x41   :  { %741 = vmatpush.bf16.msrb.mxu0 %v1335_v12 }
  0x42   :  { %760 = vmatpush.bf16.msrb.mxu1 %v1343_v13 }
  0x43   :  { %779 = vmatpush.bf16.msrb.mxu2 %v1351_v14 }
  0x44   :  { %798 = vmatpush.bf16.msrb.mxu3 %v1359_v15 }
  0x45   :  { %742 = vmatpush.bf16.msrb.mxu0 %v1334_v16 }
  0x46   :  { %761 = vmatpush.bf16.msrb.mxu1 %v1342_v17 }
  0x47   :  { %780 = vmatpush.bf16.msrb.mxu2 %v1350_v18 }
  0x48   :  { %799 = vmatpush.bf16.msrb.mxu3 %v1358_v19 }
  0x49   :  { %743 = vmatpush.bf16.msrb.mxu0 %v1333_v20 }
  0x4a   :  { %762 = vmatpush.bf16.msrb.mxu1 %v1341_v21 }
  0x4b   :  { %781 = vmatpush.bf16.msrb.mxu2 %v1349_v22 }
  0x4c   :  { %800 = vmatpush.bf16.msrb.mxu3 %v1357_v23  ;;  %744 = vmatmul.bf16.vlgmr.msrb.gmra.mxu0 %v974_v32 }
  0x4d   :  { %763 = vmatmul.bf16.vlgmr.msrb.gmra.mxu1 %v978_v33 }
  0x4e   :  { %782 = vmatmul.bf16.vlgmr.msrb.gmra.mxu2 %v982_v34 }
  0x4f   :  { %801 = vmatmul.bf16.vlgmr.msrb.gmra.mxu3 %v986_v35 }
  0x5c   :  { %749 = vmatmul.bf16.gmra.mxu0 %v1006_v44 }
  0x5d   :  { %768 = vmatmul.bf16.gmra.mxu1 %v1010_v45 }
  0x5e   :  { %787 = vmatmul.bf16.gmra.mxu2 %v1014_v46 }
  0x5f   :  { %806 = vmatmul.bf16.gmra.mxu3 %v1018_v47 }
  0xa9   :  { %v669_v48 = vpop.f32.mrf.mxu0 }
  0xaa   :  { %v688_v49 = vpop.f32.mrf.mxu1  ;;  %v670_v59 = vadd.f32 %v1374_v56, %v669_v48 }
  0xac   :  { %v689_v62 = vadd.f32 %v688_v49, %v670_v59  ;;  %v812_v49 = vlaneseq }
  0xb1   :  { %v707_v50 = vpop.f32.mrf.mxu2  ;;  %v671_v52 = vpop.f32.mrf.mxu0 }
  0xb2   :  { %v726_v51 = vpop.f32.mrf.mxu3  ;;  %v690_v53 = vpop.f32.mrf.mxu1  ;;  %v708_v1 = vadd.f32 %v707_v50, %v689_v62  ;;  %v672_v2 = vadd.f32 %v1374_v56, %v671_v52  ;;  %v1491_v50 = vand.u32 127, %v812_v49 }
  0xb4   :  { %v727_v5 = vadd.f32 %v726_v51, %v708_v1  ;;  %v691_v8 = vadd.f32 %v690_v53, %v672_v2 }
  0xb9   :  { %v709_v54 = vpop.f32.mrf.mxu2  ;;  %v674_v57 = vpop.f32.mrf.mxu0 }
  0xba   :  { %v728_v55 = vpop.f32.mrf.mxu3  ;;  %v693_v58 = vpop.f32.mrf.mxu1  ;;  %v710_v10 = vadd.f32 %v709_v54, %v691_v8  ;;  %v675_v11 = vadd.f32 %v1374_v56, %v674_v57 }
  0xbc   :  { %v729_v15 = vadd.f32 %v728_v55, %v710_v10  ;;  %v694_v16 = vadd.f32 %v693_v58, %v675_v11 }
  0xc1   :  { %v712_v60 = vpop.f32.mrf.mxu2  ;;  %v676_v63 = vpop.f32.mrf.mxu0 }
  0xc2   :  { %v731_v61 = vpop.f32.mrf.mxu3  ;;  %v695_v0 = vpop.f32.mrf.mxu1  ;;  %v713_v22 = vadd.f32 %v712_v60, %v694_v16  ;;  %v677_v23 = vadd.f32 %v1374_v56, %v676_v63 }
  0xc4   :  { %v732_v27 = vadd.f32 %v731_v61, %v713_v22  ;;  %v696_v30 = vadd.f32 %v695_v0, %v677_v23 }
  0xc9   :  { %v714_v3 = vpop.f32.mrf.mxu2  ;;  %v745_v6 = vpop.f32.mrf.mxu0 }
  0xca   :  { %v733_v4 = vpop.f32.mrf.mxu3  ;;  %v764_v7 = vpop.f32.mrf.mxu1  ;;  %v746_v9 = vadd.f32 %v745_v6, %v727_v5  ;;  %v715_v34 = vadd.f32 %v714_v3, %v696_v30 }
  0xcc   :  { %v765_v12 = vadd.f32 %v764_v7, %v746_v9  ;;  %v734_v38 = vadd.f32 %v733_v4, %v715_v34 }
  0xd1   :  { %v783_v13 = vpop.f32.mrf.mxu2  ;;  %v747_v18 = vpop.f32.mrf.mxu0 }
  0xd2   :  { %v802_v14 = vpop.f32.mrf.mxu3  ;;  %v784_v17 = vadd.f32 %v783_v13, %v765_v12  ;;  %v766_v19 = vpop.f32.mrf.mxu1  ;;  %v748_v21 = vadd.f32 %v747_v18, %v729_v15 }
  0xd4   :  { %v803_v20 = vadd.f32 %v802_v14, %v784_v17  ;;  %v767_v24 = vadd.f32 %v766_v19, %v748_v21 }
  0xd6   :  { %814 = vmax.xlane.f32.xlu1 %v803_v20 }
  0xd9   :  { %v785_v25 = vpop.f32.mrf.mxu2  ;;  %v750_v29 = vpop.f32.mrf.mxu0 }
  0xda   :  { %v804_v26 = vpop.f32.mrf.mxu3  ;;  %v786_v28 = vadd.f32 %v785_v25, %v767_v24  ;;  %v751_v32 = vadd.f32 %v750_v29, %v732_v27  ;;  %v769_v33 = vpop.f32.mrf.mxu1 }
  0xdc   :  { %v805_v31 = vadd.f32 %v804_v26, %v786_v28  ;;  %v770_v35 = vadd.f32 %v769_v33, %v751_v32  ;;  %v906_v32 = vand.u32 1, %v1491_v50 }
  0xde   :  { %816 = vmax.xlane.f32.xlu1 %v805_v31 }
  0xe1   :  { %v788_v36 = vpop.f32.mrf.mxu2  ;;  %v752_v40 = vpop.f32.mrf.mxu0 }
  0xe2   :  { %v807_v37 = vpop.f32.mrf.mxu3  ;;  %v789_v39 = vadd.f32 %v788_v36, %v770_v35  ;;  %v753_v42 = vadd.f32 %v752_v40, %v734_v38  ;;  %v771_v43 = vpop.f32.mrf.mxu1 }
  0xe4   :  { %v808_v41 = vadd.f32 %v807_v37, %v789_v39  ;;  %v772_v44 = vadd.f32 %v771_v43, %v753_v42  ;;  %v1460_v42 = vmov 0.0  }
  0xe6   :  { %818 = vmax.xlane.f32.xlu0 %v808_v41 }
  0xe9   :  { %v790_v45 = vpop.f32.mrf.mxu2 }
  0xea   :  { %v791_v46 = vadd.f32 %v790_v45, %v772_v44  ;;  %v809_v47 = vpop.f32.mrf.mxu3 }
  0xec   :  { %v810_v48 = vadd.f32 %v809_v47, %v791_v46 }
  0xee   :  { %820 = vmax.xlane.f32.xlu0 %v810_v48 }
 0x149   :  { %v815_v51 = vpop.xlane.xlu1 %814 }
 0x14a   :  { %vm822_vm0 = vcmp.eq.f32.partialorder %v803_v20, %v815_v51 }
 0x14b   :  { %v826_v52 = vsel %vm822_vm0, %v1491_v50, 128 }
 0x14c   :  { %v831_v53 = vshra.s32 %v826_v52, 16  ;;  %v830_v3 = vand.u32 65535, %v826_v52 }
 0x14e   :  { %v833_v54 = vcvt.s32.f32 %v831_v53  ;;  %v832_v5 = vcvt.s32.f32 %v830_v3 }
 0x150   :  { %834 = vmin.xlane.f32.xlu0 %v833_v54 }
 0x151   :  { %v817_v55 = vpop.xlane.xlu1 %816 }
 0x152   :  { %vm823_vm1 = vcmp.eq.f32.partialorder %v805_v31, %v817_v55  ;;  %v901_v31 = vshrl.u32 %v812_v49, 7 }
 0x153   :  { %v827_v56 = vsel %vm823_vm1, %v1491_v50, 128 }
 0x154   :  { %v845_v57 = vshra.s32 %v827_v56, 16  ;;  %v844_v11 = vand.u32 65535, %v827_v56  ;;  %vm914_vm8 = vcmp.eq.s32.totalorder %v906_v32, %v901_v31 }
 0x155   :  { %v1279_v43 = vsel %vm914_vm8, 1.0, %v1460_v42 }
 0x156   :  { %v847_v58 = vcvt.s32.f32 %v845_v57  ;;  %v846_v16 = vcvt.s32.f32 %v844_v11  ;;  %v917_v44 = vpack.c.bf16 %v1279_v43, %v1279_v43 }
 0x158   :  { %848 = vmin.xlane.f32.xlu1 %v847_v58 }
 0x159   :  { %v819_v59 = vpop.xlane.xlu0 %818 }
 0x15a   :  { %vm824_vm2 = vcmp.eq.f32.partialorder %v808_v41, %v819_v59  ;;  %v1459_v41 = vmov 1.0|1.0  }
 0x15b   :  { %v828_v60 = vsel %vm824_vm2, %v1491_v50, 128 }
 0x15c   :  { %v859_v61 = vshra.s32 %v828_v60, 16  ;;  %v858_v7 = vand.u32 65535, %v828_v60 }
 0x15e   :  { %v861_v62 = vcvt.s32.f32 %v859_v61  ;;  %v860_v9 = vcvt.s32.f32 %v858_v7 }
 0x160   :  { %862 = vmin.xlane.f32.xlu2 %v861_v62 }
 0x161   :  { %v821_v63 = vpop.xlane.xlu0 %820 }
 0x162   :  { %vm825_vm3 = vcmp.eq.f32.partialorder %v810_v48, %v821_v63 }
 0x163   :  { %v829_v0 = vsel %vm825_vm3, %v1491_v50, 128 }
 0x164   :  { %v873_v1 = vshra.s32 %v829_v0, 16  ;;  %v872_v12 = vand.u32 65535, %v829_v0 }
 0x166   :  { %v875_v2 = vcvt.s32.f32 %v873_v1  ;;  %v874_v15 = vcvt.s32.f32 %v872_v12 }
 0x168   :  { %876 = vmin.xlane.f32.xlu2 %v875_v2 }
 0x1c3   :  { %v835_v4 = vpop.xlane.xlu0 %834 }
 0x1c4   :  { %vm836_vm4 = vcmp.eq.f32.partialorder %v833_v54, %v835_v4  ;;  %v841_v25 = vcvt.f32.s32 %v835_v4 }
 0x1c5   :  { %v837_v6 = vsel %vm836_vm4, %v832_v5, inf }
 0x1c6   :  { %838 = vmin.xlane.f32.xlu1 %v837_v6  ;;  %v842_v37 = vshll.u32 %v841_v25, 16 }
 0x1cb   :  { %v849_v13 = vpop.xlane.xlu1 %848 }
 0x1cc   :  { %vm850_vm6 = vcmp.eq.f32.partialorder %v847_v58, %v849_v13  ;;  %v855_v21 = vcvt.f32.s32 %v849_v13 }
 0x1cd   :  { %v851_v18 = vsel %vm850_vm6, %v846_v16, inf }
 0x1ce   :  { %v856_v27 = vshll.u32 %v855_v21, 16 }
 0x1d3   :  { %v863_v8 = vpop.xlane.xlu2 %862 }
 0x1d4   :  { %vm864_vm5 = vcmp.eq.f32.partialorder %v861_v62, %v863_v8  ;;  %v869_v20 = vcvt.f32.s32 %v863_v8 }
 0x1d5   :  { %v865_v10 = vsel %vm864_vm5, %v860_v9, inf }
 0x1d6   :  { %866 = vmin.xlane.f32.xlu2 %v865_v10  ;;  %v870_v26 = vshll.u32 %v869_v20, 16 }
 0x1db   :  { %v877_v14 = vpop.xlane.xlu2 %876 }
 0x1dc   :  { %vm878_vm7 = vcmp.eq.f32.partialorder %v875_v2, %v877_v14  ;;  %v883_v22 = vcvt.f32.s32 %v877_v14 }
 0x1dd   :  { %v879_v17 = vsel %vm878_vm7, %v874_v15, inf }
 0x1de   :  { %880 = vmin.xlane.f32.xlu0 %v879_v17  ;;  %852 = vmin.xlane.f32.xlu2 %v851_v18  ;;  %v884_v28 = vshll.u32 %v883_v22, 16 }
 0x239   :  { %v839_v24 = vpop.xlane.xlu1 %838 }
 0x23a   :  { %v840_v33 = vcvt.f32.s32 %v839_v24 }
 0x23c   :  { %v843_v40 = vadd.s32 %v842_v37, %v840_v33 }
 0x23e   :  { %vm886_vm13 = vcmp.eq.s32.totalorder %v1491_v50, %v843_v40 }
 0x249   :  { %v867_v19 = vpop.xlane.xlu2 %866 }
 0x24a   :  { %v868_v23 = vcvt.f32.s32 %v867_v19 }
 0x24c   :  { %v871_v34 = vadd.s32 %v870_v26, %v868_v23 }
 0x24e   :  { %vm888_vm9 = vcmp.eq.s32.totalorder %v1491_v50, %v871_v34 }
 0x251   :  { %v881_v29 = vpop.xlane.xlu0 %880  ;;  %v853_v30 = vpop.xlane.xlu2 %852 }
 0x252   :  { %v882_v35 = vcvt.f32.s32 %v881_v29  ;;  %v854_v36 = vcvt.f32.s32 %v853_v30 }
 0x254   :  { %v885_v38 = vadd.s32 %v884_v28, %v882_v35  ;;  %v857_v39 = vadd.s32 %v856_v27, %v854_v36 }
 0x256   :  { %vm889_vm10 = vcmp.eq.s32.totalorder %v1491_v50, %v885_v38  ;;  %vm887_vm12 = vcmp.eq.s32.totalorder %v1491_v50, %v857_v39 }
 0x257   :  { %vm1280_vm11 = vmpackc.low %vm889_vm10, %vm888_vm9 }
 0x258   :  { %1281 = vmatpush.bf16.msk.msra.mxu0 %vm1280_vm11, %v1459_v41  ;;  %vm1282_vm14 = vmpackc.low %vm887_vm12, %vm886_vm13 }
 0x25c   :  { %1283 = vmatpush.bf16.msk.msra.mxu0 %vm1282_vm14, %v1459_v41 }
 0x25f   :  { %1284 = vmatmul.msk.bf16.vlgmr.msra.gmra.mxu0 %vm918_vm15, %v917_v44 }
 0x2dc   :  { %v931_v45 = vpop.f32.mrf.mxu0 }
 0x2dd   :  { %v935_v46 = vmul.f32 0.0625, %v931_v45 }
 0x2df   :  { %936 = vst [vmem:[#allocation7] sm:$0xff] %v935_v46 }
 0x2e0   :  { %947 = dma.vmem_to_hbm [thread:$0]  %s943_s26, 128, %s945_s29, [#allocation4]  }
 0x2e4   :  { %v933_v47 = vpop.f32.mrf.mxu0 }
 0x2e5   :  { %1451 = dma.done.wait [#allocation4], 128  }
 0x2e6   :  { %1452 = vsyncadd [#allocation4], 4294967168 }
 0x2e7   :  { %952 = vsyncpa [#allocation3], 1 }
 0x2e8   :  { %953 = vsyncpa [#allocation6], 1 }
 0x2e9   :  { %954 = vsyncpa [#allocation4], 1 }

</bundles_post_ra>
